<compile_context>
chip_gen: v5e
topology: v5e:2x2
jax: 0.10.0
libtpu: 0.0.40
codegen_flags: <defaults>
</compile_context>

<pallas_src>
import functools

import jax
import jax.numpy as jnp
from jax.experimental import pallas as pl
from jax.experimental.pallas import tpu as pltpu

_LANE = 128          # TPU lane width (last dim of a vreg)
_SUBLANE = 8         # f32 sublane height
_SMALL_BYTES = 256 * 1024   # below this, skip Pallas and let XLA fuse


def _round_up(n, m):
    return (n + m - 1) // m * m


# --------------------------------------------------------------------------
# Kernel:  out = x @ W + b + x   (W/b are the packed value weight / bias)
# --------------------------------------------------------------------------
def _sa_kernel(x_ref, w_ref, b_ref, o_ref):
    x = x_ref[...]
    acc = jnp.dot(x, w_ref[...], preferred_element_type=jnp.float32)
    # Explicit f32 residual add (kept out of the matmul for exactness).
    o_ref[...] = (acc + b_ref[...] + x.astype(jnp.float32)).astype(o_ref.dtype)


# --------------------------------------------------------------------------
# One-time, parameter-load-time packing (runs eagerly, NOT inside the jit).
# --------------------------------------------------------------------------
def prepare_params(wv, bv):
    """wv: (D, D) PyTorch (out, in) layout; bv: (D,).

    Returns (w_big, b_big, pack):
      * transpose once so the kernel does a plain x @ W,
      * pack `pack = 128 // D` batch rows per 128-lane group via a
        block-diagonal kron(I_pack, Wv^T) weight when 128 % D == 0,
      * otherwise zero-pad the lane dim up to a multiple of 128.
    Either way the kernel's last dim is a multiple of 128 -> unmasked vst.
    """
    D = wv.shape[0]
    w_t = jnp.asarray(wv).T                       # (in, out)
    bv = jnp.asarray(bv)
    if D % _LANE == 0:
        pack, d_pad = 1, D
    elif _LANE % D == 0:
        pack, d_pad = _LANE // D, _LANE
    else:
        pack, d_pad = 1, _round_up(D, _LANE)

    w_big = jnp.kron(jnp.eye(pack, dtype=w_t.dtype), w_t)   # (pack*D, pack*D)
    b_big = jnp.tile(bv, pack)                               # (pack*D,)
    if pack * D < d_pad:                                     # lane zero-pad path
        w_big = jnp.zeros((d_pad, d_pad), w_t.dtype).at[: pack * D, : pack * D].set(w_big)
        b_big = jnp.zeros((d_pad,), bv.dtype).at[: pack * D].set(b_big)
    return w_big, b_big.reshape(1, d_pad), pack


# --------------------------------------------------------------------------
# Pallas path
# --------------------------------------------------------------------------
def _self_attention_pallas(x, w_big, b_big, *, pack, block_b):
    B, D = x.shape
    d_pad = w_big.shape[0]

    # ---- pack rows into 128-lane groups (free row-major reshape if aligned)
    b_pack = _round_up(B, pack)
    xp = x if b_pack == B else jnp.pad(x, ((0, b_pack - B), (0, 0)))
    rows = b_pack // pack
    xp = xp.reshape(rows, pack * D)
    if pack * D < d_pad:                                     # lane zero-pad path
        xp = jnp.pad(xp, ((0, 0), (0, d_pad - pack * D)))

    # ---- row tile: large (amortize per-step overhead), but >= 2 grid steps
    #      whenever possible so v7x can shard rows across its 2 TensorCores.
    tb = max(_SUBLANE, min(_round_up(block_b, _SUBLANE), _round_up(rows, _SUBLANE)))
    if _round_up(rows, tb) // tb < 2 and rows > _SUBLANE:
        tb = _round_up(pl.cdiv(rows, 2), _SUBLANE)
    rows_pad = _round_up(rows, tb)
    if rows_pad != rows:
        xp = jnp.pad(xp, ((0, rows_pad - rows), (0, 0)))

    # ---- VMEM budget: only raise the scoped limit if a caller-requested
    #      block_b actually needs it (v5e default scoped VMEM is 16 MiB).
    itemsize = jnp.dtype(x.dtype).itemsize
    io_bytes = 2 * (2 * tb * d_pad * itemsize)               # 2x in + 2x out buffers
    wb_bytes = 2 * (w_big.size * jnp.dtype(w_big.dtype).itemsize
                    + b_big.size * jnp.dtype(b_big.dtype).itemsize)
    compiler_kwargs = {"dimension_semantics": ("parallel",)}
    if io_bytes + wb_bytes > 12 * (1 << 20):
        compiler_kwargs["vmem_limit_bytes"] = int(io_bytes + wb_bytes + (4 << 20))

    out = pl.pallas_call(
        _sa_kernel,
        out_shape=jax.ShapeDtypeStruct((rows_pad, d_pad), x.dtype),
        grid_spec=pltpu.PrefetchScalarGridSpec(
            num_scalar_prefetch=0,
            grid=(rows_pad // tb,),
            in_specs=[
                pl.BlockSpec((tb, d_pad), lambda i: (i, 0)),     # x tile (pipelined)
                pl.BlockSpec((d_pad, d_pad), lambda i: (0, 0)),  # weight (resident)
                pl.BlockSpec((1, d_pad), lambda i: (0, 0)),      # bias (resident)
            ],
            out_specs=pl.BlockSpec((tb, d_pad), lambda i: (i, 0)),
        ),
        compiler_params=pltpu.CompilerParams(**compiler_kwargs),
    )(xp, w_big, b_big)

    # ---- undo packing / padding (free reshape on the aligned fast path)
    if rows_pad == rows and pack * D == d_pad:
        out = out.reshape(b_pack, D)
    else:
        out = out[:rows, : pack * D].reshape(b_pack, D)
    return out if b_pack == B else out[:B]


# --------------------------------------------------------------------------
# Factory: pack weights ONCE, return a jitted forward.
# --------------------------------------------------------------------------
def make_self_attention(wq, bq, wk, bk, wv, bv, *, block_b=1024):
    """Matches the PyTorch module's parameter set.

    wq/bq/wk/bk are dead code (softmax over the singleton score axis == 1),
    so output == x + value(x).  Weight packing happens here, once, at
    parameter-load time — never inside the jitted forward.
    """
    del wq, bq, wk, bk
    w_big, b_big, pack = prepare_params(wv, bv)      # eager, one-time
    w_t = jnp.asarray(wv).T                          # unpacked copy for tiny-B path
    b_row = jnp.asarray(bv).reshape(1, -1)

    @functools.partial(jax.jit, static_argnames=("force_pallas",))
    def forward(x, force_pallas=False):
        B, D = x.shape
        if not force_pallas and B * D * jnp.dtype(x.dtype).itemsize <= _SMALL_BYTES:
            # Tiny tensor: custom-call/DMA overhead dominates — let XLA fuse.
            acc = jnp.dot(x, w_t, preferred_element_type=jnp.float32)
            return (acc + b_row + x.astype(jnp.float32)).astype(x.dtype)
        return _self_attention_pallas(x, w_big, b_big, pack=pack, block_b=block_b)

    return forward


# --------------------------------------------------------------------------
# Pure-JAX reference faithfully mirroring the PyTorch forward.
# --------------------------------------------------------------------------
def self_attention_ref(x, wq, bq, wk, bk, wv, bv):
    D = x.shape[-1]
    scale = 1.0 / (D ** 0.5)
    q = x @ wq.T + bq
    k = x @ wk.T + bk
    v = x @ wv.T + bv
    scores = jnp.einsum("bd,bd->b", q, k)[:, None, None] * scale    # (B,1,1)
    weights = jax.nn.softmax(scores, axis=-1)                        # == 1.0
    attn = (weights @ v[:, None, :])[:, 0, :]                        # (B,D)
    return x + attn


if __name__ == "__main__":
    D = 32  # in_dim, consistent with a 2-D (batch, in_dim) input to nn.Linear

    key = jax.random.PRNGKey(0)
    kx, kq, kk, kv, kbq, kbk, kbv = jax.random.split(key, 7)

    bound = 1.0 / (D ** 0.5)  # PyTorch nn.Linear default init range
    wq = jax.random.uniform(kq, (D, D), jnp.float32, -bound, bound)
    wk = jax.random.uniform(kk, (D, D), jnp.float32, -bound, bound)
    wv = jax.random.uniform(kv, (D, D), jnp.float32, -bound, bound)
    bq = jax.random.uniform(kbq, (D,), jnp.float32, -bound, bound)
    bk = jax.random.uniform(kbk, (D,), jnp.float32, -bound, bound)
    bv = jax.random.uniform(kbv, (D,), jnp.float32, -bound, bound)

    attn = make_self_attention(wq, bq, wk, bk, wv, bv)

    def check(x, out, tag):
        ref = self_attention_ref(x, wq, bq, wk, bk, wv, bv)
        assert out.shape == ref.shape, f"shape mismatch ({tag})"
        assert jnp.allclose(out, ref, atol=1e-5, rtol=1e-5), f"mismatch vs reference ({tag})"

    # 1) Small batch, forced through the Pallas kernel (single grid step).
    B = 8
    x = jax.random.normal(kx, (B, D), dtype=jnp.float32)
    out = jax.block_until_ready(attn(x, force_pallas=True))
    check(x, out, "B=8 pallas")

    # 2) Small non-aligned batch -> tiny-tensor XLA fallback path.
    x2 = jax.random.normal(jax.random.PRNGKey(1), (200, D), dtype=jnp.float32)
    out2 = jax.block_until_ready(attn(x2))
    check(x2, out2, "B=200 fallback")

    # 3) Non-aligned batch forced through Pallas -> exercises pad/slice path.
    x3 = jax.random.normal(jax.random.PRNGKey(2), (1000, D), dtype=jnp.float32)
    out3 = jax.block_until_ready(attn(x3, force_pallas=True))
    check(x3, out3, "B=1000 pallas ragged")

    # 4) Large aligned batch -> zero-copy Pallas fast path, 2 grid steps.
    x4 = jax.random.normal(jax.random.PRNGKey(3), (4096, D), dtype=jnp.float32)
    out4 = jax.block_until_ready(attn(x4))
    check(x4, out4, "B=4096 pallas aligned")

    print("KERNEL_OK")
</pallas_src>

<mosaic_0001>
module attributes {stable_mosaic.version = 11 : i64} {
  func.func @_sa_kernel(%arg0: i32, %arg1: memref<8x128xf32, #tpu.memory_space<vmem>>, %arg2: memref<128x128xf32, #tpu.memory_space<vmem>>, %arg3: memref<1x128xf32, #tpu.memory_space<vmem>>, %arg4: memref<8x128xf32, #tpu.memory_space<vmem>>) attributes {dimension_semantics = [#tpu.dimension_semantics<parallel>], iteration_bounds = array<i64: 1>, scalar_prefetch = 0 : i64, scratch_operands = 0 : i64, tpu.core_type = #tpu.core_type<tc>, window_params = [{transform_indices = @transform_0, window_bounds = array<i64: 8, 128>}, {pipeline_mode = #tpu.pipeline_mode<synchronous>, transform_indices = @transform_1, window_bounds = array<i64: 128, 128>}, {pipeline_mode = #tpu.pipeline_mode<synchronous>, transform_indices = @transform_2, window_bounds = array<i64: 1, 128>}, {transform_indices = @transform_3, window_bounds = array<i64: 8, 128>}]} {
    %c0 = arith.constant 0 : index
    %c0_0 = arith.constant 0 : index
    %0 = vector.load %arg1[%c0, %c0_0] : memref<8x128xf32, #tpu.memory_space<vmem>>, vector<8x128xf32>
    %c0_1 = arith.constant 0 : index
    %c0_2 = arith.constant 0 : index
    %1 = vector.load %arg2[%c0_1, %c0_2] : memref<128x128xf32, #tpu.memory_space<vmem>>, vector<128x128xf32>
    %cst = arith.constant dense<0.000000e+00> : vector<8x128xf32>
    %2 = tpu.matmul %0, %1, %cst {dimension_numbers = #tpu.dot_dimension_numbers<[1], [0], [0], [1], [0, 0, 1, 1], [], []>} : vector<8x128xf32>, vector<128x128xf32>, vector<8x128xf32> -> vector<8x128xf32>
    %c0_3 = arith.constant 0 : index
    %c0_4 = arith.constant 0 : index
    %3 = vector.load %arg3[%c0_3, %c0_4] : memref<1x128xf32, #tpu.memory_space<vmem>>, vector<1x128xf32>
    %4 = vector.broadcast %3 : vector<1x128xf32> to vector<8x128xf32>
    %5 = arith.addf %2, %4 : vector<8x128xf32>
    %6 = arith.addf %5, %0 : vector<8x128xf32>
    %c0_5 = arith.constant 0 : index
    %c0_6 = arith.constant 0 : index
    %7 = vector.load %arg4[%c0_5, %c0_6] : memref<8x128xf32, #tpu.memory_space<vmem>>, vector<8x128xf32>
    tpu.vector_store %arg4[%c0_5, %c0_6], %6 {strides = array<i32>} : memref<8x128xf32, #tpu.memory_space<vmem>>, vector<8x128xf32>,
    return
  }
  func.func @transform_0(%arg0: i32) -> (i32, i32) {
    %c0_i32 = arith.constant 0 : i32
    %c0_i32_0 = arith.constant 0 : i32
    return %arg0, %c0_i32 : i32, i32
  }
  func.func @transform_1(%arg0: i32) -> (i32, i32) {
    %c0_i32 = arith.constant 0 : i32
    %c0_i32_0 = arith.constant 0 : i32
    %c0_i32_1 = arith.constant 0 : i32
    return %c0_i32, %c0_i32_0 : i32, i32
  }
  func.func @transform_2(%arg0: i32) -> (i32, i32) {
    %c0_i32 = arith.constant 0 : i32
    %c0_i32_0 = arith.constant 0 : i32
    %c0_i32_1 = arith.constant 0 : i32
    return %c0_i32, %c0_i32_0 : i32, i32
  }
  func.func @transform_3(%arg0: i32) -> (i32, i32) {
    %c0_i32 = arith.constant 0 : i32
    %c0_i32_0 = arith.constant 0 : i32
    return %arg0, %c0_i32 : i32, i32
  }
}

</mosaic_0001>

<bundles_post_ra>
// kernel: forward.1
= control target key start
LH: loop header
LB: loop body
LE: loop exit
PB: predicated region body
PF: predicated region fallthrough
CT: control target
= control target key end

     0   :  { %8 = vsyncpa [#allocation3], 0  ;;  %s108_s15 = smov [#allocation2]   ;;  %s109_s17 = smov 128   ;;  %s143_s0 = inlined_call_operand.vmem [shape: f32[8,128], index: 0, kind: input, shape index: {}]   ;;  %s144_s1 = inlined_call_operand.hbm [shape: f32[128,128], index: 1, kind: input, shape index: {}]   ;;  %s145_s2 = inlined_call_operand.vmem [shape: f32[1,128], index: 2, kind: input, shape index: {}]   ;;  %s146_s3 = inlined_call_operand.vmem [shape: f32[8,128], index: 3, kind: output, shape index: {}]  }
   0x1   :  { %s15_s14 = sshll.u32 %s144_s1, 4  ;;  %s17_s16 = sshll.u32 %s108_s15, 4  ;;  %s16_s14 = int_to_ptr.hbm [resolvable:$true] %s15_s14  ;;  %s18_s16 = int_to_ptr.vmem [resolvable:$true] %s17_s16 }
   0x2   :  { %s110_s18 = smov 8  }
   0x3   :  { %23 = dma.hbm_to_vmem [thread:$0]  %s16_s14, 2048, %s18_s16, [#allocation3], %s109_s17, %s109_s17, %s110_s18  }
   0x4   :  { %106 = dma.done.wait [#allocation3], 2048  }
   0x5   :  { %107 = vsyncadd [#allocation3], 4294965248  ;;  %v46_v0 = vld [vmem:[#allocation2 + $0x78] sm:$0xff]  ;;  %v45_v1 = vld [vmem:[#allocation2 + $0x70] sm:$0xff] }
   0x6   :  { %51 = vmatpush.msra.mxu0 %v46_v0  ;;  %v44_v2 = vld [vmem:[#allocation2 + $0x68] sm:$0xff]  ;;  %v43_v3 = vld [vmem:[#allocation2 + $0x60] sm:$0xff]  ;;  %v42_v4 = vld [vmem:[#allocation2 + $0x58] sm:$0xff] }
   0x7   :  { %v41_v5 = vld [vmem:[#allocation2 + $0x50] sm:$0xff]  ;;  %v40_v6 = vld [vmem:[#allocation2 + $0x48] sm:$0xff]  ;;  %v39_v7 = vld [vmem:[#allocation2 + $0x40] sm:$0xff] }
   0x8   :  { %52 = vmatpush.msra.mxu0 %v45_v1  ;;  %v38_v8 = vld [vmem:[#allocation2 + $0x38] sm:$0xff]  ;;  %v37_v9 = vld [vmem:[#allocation2 + $0x30] sm:$0xff]  ;;  %v36_v10 = vld [vmem:[#allocation2 + $0x28] sm:$0xff] }
   0x9   :  { %v35_v11 = vld [vmem:[#allocation2 + $0x20] sm:$0xff]  ;;  %v34_v12 = vld [vmem:[#allocation2 + $0x18] sm:$0xff]  ;;  %v33_v13 = vld [vmem:[#allocation2 + $0x10] sm:$0xff] }
   0xa   :  { %53 = vmatpush.msra.mxu0 %v44_v2  ;;  %v32_v14 = vld [vmem:[#allocation2 + $0x8] sm:$0xff]  ;;  %v31_v15 = vld [vmem:[#allocation2] sm:$0xff] }
   0xb   :  { %v30_v16 = vld [vmem:[%s143_s0] sm:$0xff] }
   0xc   :  { %54 = vmatpush.msra.mxu0 %v43_v3  ;;  %v81_v17 = vld [vmem:[%s145_s2] ss:$0 sm:$0xff] }
   0xe   :  { %55 = vmatpush.msra.mxu0 %v42_v4 }
  0x10   :  { %56 = vmatpush.msra.mxu0 %v41_v5 }
  0x12   :  { %57 = vmatpush.msra.mxu0 %v40_v6 }
  0x14   :  { %58 = vmatpush.msra.mxu0 %v39_v7 }
  0x16   :  { %59 = vmatpush.msra.mxu0 %v38_v8 }
  0x18   :  { %60 = vmatpush.msra.mxu0 %v37_v9 }
  0x1a   :  { %61 = vmatpush.msra.mxu0 %v36_v10 }
  0x1c   :  { %62 = vmatpush.msra.mxu0 %v35_v11 }
  0x1e   :  { %63 = vmatpush.msra.mxu0 %v34_v12 }
  0x20   :  { %64 = vmatpush.msra.mxu0 %v33_v13 }
  0x22   :  { %65 = vmatpush.msra.mxu0 %v32_v14 }
  0x24   :  { %66 = vmatpush.msra.mxu0 %v31_v15 }
  0x25   :  { %67 = vmatmul.f32.vlgmr.msra.gmra.mxu0 %v30_v16 }
  0xa2   :  { %v68_v18 = vpop.f32.mrf.mxu0 }
  0xa3   :  { %v69_v19 = vadd.f32 %v81_v17, %v68_v18 }
  0xa5   :  { %v71_v20 = vadd.f32 %v69_v19, %v30_v16 }
  0xa7   :  { %72 = vst [vmem:[%s146_s3] sm:$0xff] %v71_v20 }
  0xa8   :  { %77 = vsyncpa [#allocation3], 1 }

</bundles_post_ra>
